<compile_context>
chip_gen: v5e
topology: v5e:2x2
jax: 0.10.0
libtpu: 0.0.40
codegen_flags: <defaults>
</compile_context>

<pallas_src>
import math

import jax
import jax.numpy as jnp
from jax.experimental import pallas as pl
from jax.experimental.pallas import tpu as pltpu

# ---- static problem configuration (small, consistent with the module) ------
BATCH = 8          # demo batch (kernel also handles large batches via the grid)
INPUT_SIZE = 64    # input_size
HIDDEN = 32        # hidden_size
OUTPUT = 2         # output_size (malware / benign logits)
LANE = 128         # lane-dense padded output width


def malware_detector_kernel(x_ref, slab1_ref, slab2_ref, out_ref):
    """Fused single-timestep RNN + Linear on one batch tile.

    x_ref     : (TB, D)      f32 input rows
    slab1_ref : (D+8, H)     rows [0:D] = W_ih^T, row D = b_ih + b_hh
    slab2_ref : (H+8, 128)   rows [0:H] = W_fc^T (lane-padded), row H = b_fc (padded)
    out_ref   : (TB, 128)    lane-dense logits (first OUTPUT columns valid)
    """
    D = x_ref.shape[1]
    H = slab1_ref.shape[1]

    # h1 = tanh(x @ W_ih^T + b_ih + b_hh): one MXU push, tanh on the EUP.
    h = jnp.tanh(
        jnp.dot(x_ref[...], slab1_ref[:D, :], preferred_element_type=jnp.float32)
        + slab1_ref[D:D + 1, :]
    )
    # out = h1 @ W_fc^T + b_fc, lane-padded to 128 -> unmasked store.
    out_ref[...] = (
        jnp.dot(h, slab2_ref[:H, :], preferred_element_type=jnp.float32)
        + slab2_ref[H:H + 1, :]
    )


def pack_params(p):
    """One-time parameter packing (keep this OUT of the per-call forward path)."""
    H, D = p["w_ih"].shape
    O = p["fc_w"].shape[0]
    slab1 = jnp.zeros((D + 8, H), jnp.float32)
    slab1 = slab1.at[:D, :].set(p["w_ih"].T.astype(jnp.float32))
    slab1 = slab1.at[D, :].set((p["b_ih"] + p["b_hh"]).astype(jnp.float32))
    slab2 = jnp.zeros((H + 8, LANE), jnp.float32)
    slab2 = slab2.at[:H, :O].set(p["fc_w"].T.astype(jnp.float32))
    slab2 = slab2.at[H, :O].set(p["fc_b"].astype(jnp.float32))
    return slab1, slab2


def malware_detector_forward(x, slab1, slab2, output_size=OUTPUT):
    """x: (B, input_size). Returns (B, output_size), matching the PyTorch forward."""
    B, D = x.shape
    H = slab1.shape[1]

    # Batch tiling: one tile for small batches, 128-row tiles (parallel grid) for large.
    b8 = pl.cdiv(B, 8) * 8
    tile_b = b8 if b8 <= 128 else 128
    b_pad = pl.cdiv(B, tile_b) * tile_b

    x = x.astype(jnp.float32)
    if b_pad != B:
        x = jnp.pad(x, ((0, b_pad - B), (0, 0)))

    out = pl.pallas_call(
        malware_detector_kernel,
        out_shape=jax.ShapeDtypeStruct((b_pad, LANE), jnp.float32),
        grid_spec=pltpu.PrefetchScalarGridSpec(
            num_scalar_prefetch=0,
            grid=(b_pad // tile_b,),
            in_specs=[
                pl.BlockSpec((tile_b, D), lambda i: (i, 0)),
                pl.BlockSpec((D + 8, H), lambda i: (0, 0)),
                pl.BlockSpec((H + 8, LANE), lambda i: (0, 0)),
            ],
            out_specs=pl.BlockSpec((tile_b, LANE), lambda i: (i, 0)),
        ),
        compiler_params=pltpu.CompilerParams(
            dimension_semantics=("parallel",)),
    )(x, slab1, slab2)

    return out[:B, :output_size]


# ---- deterministic synthetic parameters (PyTorch-native layouts) ------------
def init_params(key):
    ks = jax.random.split(key, 7)

    def u(k, shape, fan_in):
        b = 1.0 / math.sqrt(fan_in)
        return jax.random.uniform(k, shape, jnp.float32, minval=-b, maxval=b)

    D, H, O = INPUT_SIZE, HIDDEN, OUTPUT
    return dict(
        w_ih=u(ks[0], (H, D), H),      # nn.RNN weight_ih_l0
        w_hh=u(ks[1], (H, H), H),      # nn.RNN weight_hh_l0 (unused: h0 == 0)
        b_ih=u(ks[2], (H,), H),
        b_hh=u(ks[3], (H,), H),
        fc_w=u(ks[4], (O, H), H),      # nn.Linear weight
        fc_b=u(ks[5], (O,), H),
    )


# ---- pure-JAX reference mirroring the PyTorch forward exactly ---------------
def reference_forward(x, p):
    B = x.shape[0]
    H = p["w_hh"].shape[0]
    h0 = jnp.zeros((B, H), jnp.float32)
    h1 = jnp.tanh(x @ p["w_ih"].T + p["b_ih"] + h0 @ p["w_hh"].T + p["b_hh"])
    last_output = h1                               # out[:, -1, :] of a length-1 sequence
    return last_output @ p["fc_w"].T + p["fc_b"]


if __name__ == "__main__":
    import numpy as np

    key = jax.random.PRNGKey(0)
    kx, kp = jax.random.split(key)
    x = jax.random.normal(kx, (BATCH, INPUT_SIZE), jnp.float32)
    params = init_params(kp)

    # Pack once (init-time), reuse for every forward call.
    slab1, slab2 = pack_params(params)
    slab1, slab2 = jax.block_until_ready((slab1, slab2))

    out = jax.block_until_ready(malware_detector_forward(x, slab1, slab2))
    ref = jax.block_until_ready(reference_forward(x, params))

    assert out.shape == (BATCH, OUTPUT)
    np.testing.assert_allclose(np.asarray(out), np.asarray(ref), rtol=1e-5, atol=1e-5)
    print("KERNEL_OK")
</pallas_src>

<mosaic_0001>
module attributes {stable_mosaic.version = 11 : i64} {
  func.func @malware_detector_kernel(%arg0: i32, %arg1: memref<8x64xf32, #tpu.memory_space<vmem>>, %arg2: memref<72x32xf32, #tpu.memory_space<vmem>>, %arg3: memref<40x128xf32, #tpu.memory_space<vmem>>, %arg4: memref<8x128xf32, #tpu.memory_space<vmem>>) attributes {dimension_semantics = [#tpu.dimension_semantics<parallel>], iteration_bounds = array<i64: 1>, scalar_prefetch = 0 : i64, scratch_operands = 0 : i64, tpu.core_type = #tpu.core_type<tc>, window_params = [{transform_indices = @transform_0, window_bounds = array<i64: 8, 64>}, {pipeline_mode = #tpu.pipeline_mode<synchronous>, transform_indices = @transform_1, window_bounds = array<i64: 72, 32>}, {pipeline_mode = #tpu.pipeline_mode<synchronous>, transform_indices = @transform_2, window_bounds = array<i64: 40, 128>}, {transform_indices = @transform_3, window_bounds = array<i64: 8, 128>}]} {
    %c0 = arith.constant 0 : index
    %c0_0 = arith.constant 0 : index
    %0 = vector.load %arg1[%c0, %c0_0] : memref<8x64xf32, #tpu.memory_space<vmem>>, vector<8x64xf32>
    %c0_1 = arith.constant 0 : index
    %c0_2 = arith.constant 0 : index
    %1 = vector.load %arg2[%c0_1, %c0_2] : memref<72x32xf32, #tpu.memory_space<vmem>>, vector<64x32xf32>
    %cst = arith.constant dense<0.000000e+00> : vector<8x32xf32>
    %2 = tpu.matmul %0, %1, %cst {dimension_numbers = #tpu.dot_dimension_numbers<[1], [0], [0], [1], [0, 0, 1, 1], [], []>} : vector<8x64xf32>, vector<64x32xf32>, vector<8x32xf32> -> vector<8x32xf32>
    %c64 = arith.constant 64 : index
    %c0_3 = arith.constant 0 : index
    %3 = vector.load %arg2[%c64, %c0_3] : memref<72x32xf32, #tpu.memory_space<vmem>>, vector<1x32xf32>
    %4 = vector.broadcast %3 : vector<1x32xf32> to vector<8x32xf32>
    %5 = arith.addf %2, %4 : vector<8x32xf32>
    %6 = math.tanh %5 : vector<8x32xf32>
    %c0_4 = arith.constant 0 : index
    %c0_5 = arith.constant 0 : index
    %7 = vector.load %arg3[%c0_4, %c0_5] : memref<40x128xf32, #tpu.memory_space<vmem>>, vector<32x128xf32>
    %cst_6 = arith.constant dense<0.000000e+00> : vector<8x128xf32>
    %8 = tpu.matmul %6, %7, %cst_6 {dimension_numbers = #tpu.dot_dimension_numbers<[1], [0], [0], [1], [0, 0, 1, 1], [], []>} : vector<8x32xf32>, vector<32x128xf32>, vector<8x128xf32> -> vector<8x128xf32>
    %c32 = arith.constant 32 : index
    %c0_7 = arith.constant 0 : index
    %9 = vector.load %arg3[%c32, %c0_7] : memref<40x128xf32, #tpu.memory_space<vmem>>, vector<1x128xf32>
    %10 = vector.broadcast %9 : vector<1x128xf32> to vector<8x128xf32>
    %11 = arith.addf %8, %10 : vector<8x128xf32>
    %c0_8 = arith.constant 0 : index
    %c0_9 = arith.constant 0 : index
    %12 = vector.load %arg4[%c0_8, %c0_9] : memref<8x128xf32, #tpu.memory_space<vmem>>, vector<8x128xf32>
    tpu.vector_store %arg4[%c0_8, %c0_9], %11 {strides = array<i32>} : memref<8x128xf32, #tpu.memory_space<vmem>>, vector<8x128xf32>,
    return
  }
  func.func @transform_0(%arg0: i32) -> (i32, i32) {
    %c0_i32 = arith.constant 0 : i32
    %c0_i32_0 = arith.constant 0 : i32
    return %arg0, %c0_i32 : i32, i32
  }
  func.func @transform_1(%arg0: i32) -> (i32, i32) {
    %c0_i32 = arith.constant 0 : i32
    %c0_i32_0 = arith.constant 0 : i32
    %c0_i32_1 = arith.constant 0 : i32
    return %c0_i32, %c0_i32_0 : i32, i32
  }
  func.func @transform_2(%arg0: i32) -> (i32, i32) {
    %c0_i32 = arith.constant 0 : i32
    %c0_i32_0 = arith.constant 0 : i32
    %c0_i32_1 = arith.constant 0 : i32
    return %c0_i32, %c0_i32_0 : i32, i32
  }
  func.func @transform_3(%arg0: i32) -> (i32, i32) {
    %c0_i32 = arith.constant 0 : i32
    %c0_i32_0 = arith.constant 0 : i32
    return %arg0, %c0_i32 : i32, i32
  }
}

</mosaic_0001>

<bundles_post_ra>
// kernel: tpu_custom_call.1
= control target key start
LH: loop header
LB: loop body
LE: loop exit
PB: predicated region body
PF: predicated region fallthrough
CT: control target
= control target key end

     0   :  { %s200_s0 = inlined_call_operand.vmem [shape: f32[8,64], index: 0, kind: input, shape index: {}]   ;;  %s201_s1 = inlined_call_operand.vmem [shape: f32[72,32], index: 1, kind: input, shape index: {}]   ;;  %s202_s2 = inlined_call_operand.vmem [shape: f32[40,128], index: 2, kind: input, shape index: {}]   ;;  %s203_s3 = inlined_call_operand.hbm [shape: f32[8,128], index: 3, kind: output, shape index: {}]  }
   0x1   :  { %v23_v0 = vld [vmem:[%s201_s1 + $0x38] sm:$0xff]  ;;  %v22_v1 = vld [vmem:[%s201_s1 + $0x30] sm:$0xff]  ;;  %v21_v2 = vld [vmem:[%s201_s1 + $0x28] sm:$0xff] }
   0x2   :  { %38 = vmatpush.msra.mxu0 %v23_v0  ;;  %v20_v3 = vld [vmem:[%s201_s1 + $0x20] sm:$0xff] }
   0x4   :  { %39 = vmatpush.msra.mxu0 %v22_v1 }
   0x5   :  { %8 = vsyncpa [#allocation3], 0  ;;  %v19_v4 = vld [vmem:[%s201_s1 + $0x18] sm:$0xff]  ;;  %v18_v5 = vld [vmem:[%s201_s1 + $0x10] sm:$0xff]  ;;  %vm26_vm0 = vcmask 523264   ;;  %vm57_vm1 = vcmask 261120  }
   0x6   :  { %40 = vmatpush.msra.mxu0 %v21_v2  ;;  %v17_v6 = vld [vmem:[%s201_s1 + $0x8] sm:$0xff]  ;;  %v16_v7 = vld [vmem:[%s201_s1] sm:$0xff]  ;;  %v54_v9 = vld [vmem:[%s202_s2 + $0x18] sm:$0xff]  ;;  %s131_s14 = smov [#allocation2]   ;;  %s89_s18 = sshll.u32 %s203_s3, 4  ;;  %s90_s18 = int_to_ptr.hbm [resolvable:$true] %s89_s18 }
   0x7   :  { %v15_v8 = vld [vmem:[%s200_s0] sm:$0xff]  ;;  %73 = vmatpush.msra.mxu1 %v54_v9  ;;  %v53_v10 = vld [vmem:[%s202_s2 + $0x10] sm:$0xff]  ;;  %v52_v11 = vld [vmem:[%s202_s2 + $0x8] sm:$0xff]  ;;  %s87_s15 = sshll.u32 %s131_s14, 4  ;;  %s88_s15 = int_to_ptr.vmem [resolvable:$true] %s87_s15 }
   0x8   :  { %41 = vmatpush.msra.mxu0 %v20_v3  ;;  %v51_v12 = vld [vmem:[%s202_s2] sm:$0xff] }
   0x9   :  { %74 = vmatpush.msra.mxu1 %v53_v10  ;;  %v101_v13 = vld [vmem:[%s201_s1 + $0x40] ss:$0 sm:$0xff] }
   0xa   :  { %42 = vmatpush.msra.mxu0 %v19_v4  ;;  %v102_v17 = vld [vmem:[%s202_s2 + $0x20] ss:$0 sm:$0xff] }
   0xb   :  { %75 = vmatpush.msra.mxu1 %v52_v11 }
   0xc   :  { %43 = vmatpush.msra.mxu0 %v18_v5 }
   0xd   :  { %76 = vmatpush.msra.mxu1 %v51_v12 }
   0xe   :  { %44 = vmatpush.msra.mxu0 %v17_v6 }
  0x10   :  { %45 = vmatpush.msra.mxu0 %v16_v7 }
  0x11   :  { %98 = vmatmul.msk.f32.vlgmr.msra.gmra.mxu0 %vm26_vm0, %v15_v8 }
  0x8e   :  { %v47_v14 = vpop.f32.mrf.mxu0 }
  0x8f   :  { %v48_v15 = vadd.f32 %v101_v13, %v47_v14 }
  0x91   :  { %103 = vtanh.f32 %v48_v15 }
  0x97   :  { %v104_v16 = vpop.eup %103 }
  0x98   :  { %99 = vmatmul.msk.f32.vlgmr.msra.gmra.mxu1 %vm57_vm1, %v104_v16 }
 0x115   :  { %v78_v18 = vpop.f32.mrf.mxu1 }
 0x116   :  { %v79_v19 = vadd.f32 %v102_v17, %v78_v18 }
 0x118   :  { %81 = vst [vmem:[#allocation2] sm:$0xff] %v79_v19 }
 0x119   :  { %92 = dma.vmem_to_hbm [thread:$0]  %s88_s15, 128, %s90_s18, [#allocation3]  }
 0x11a   :  { %129 = dma.done.wait [#allocation3], 128  }
 0x11b   :  { %130 = vsyncadd [#allocation3], 4294967168 }
 0x11c   :  { %97 = vsyncpa [#allocation3], 1 }

</bundles_post_ra>
